<compile_context>
chip_gen: v7x
topology: tpu7x:2x2x1
jax: 0.10.0
libtpu: 0.0.40
codegen_flags: <defaults>
</compile_context>

<pallas_src>
import jax
import jax.numpy as jnp
from jax.experimental import pallas as pl
from jax.experimental.pallas import tpu as pltpu

H = 128   # hidden width (also the padded lane width)
F = 15    # true feature width of the PyTorch module


def mlp_kernel(x_ref, w_ref, b_ref, o_ref):
    # x_ref: (TB, 128) bf16   w_ref: (3, 128, 128) bf16   b_ref: (3, 128) f32
    x = x_ref[...]

    # fc1 + ReLU  (bf16 matmul, f32 accumulation, f32 bias/ReLU)
    h1 = jnp.dot(x, w_ref[0], preferred_element_type=jnp.float32)
    h1 = jnp.maximum(h1 + b_ref[0:1, :], 0.0)

    # fc2 + ReLU
    h2 = jnp.dot(h1.astype(jnp.bfloat16), w_ref[1],
                 preferred_element_type=jnp.float32)
    h2 = jnp.maximum(h2 + b_ref[1:2, :], 0.0)

    # fc3 (no activation) -> lane-dense 128-wide output slab
    h3 = jnp.dot(h2.astype(jnp.bfloat16), w_ref[2],
                 preferred_element_type=jnp.float32)
    o_ref[...] = (h3 + b_ref[2:3, :]).astype(o_ref.dtype)


def simple_nn_forward(x, params):
    """x: (B, 15) f32; params: (w1(15,128), b1(1,128), w2(128,128), b2(1,128),
    w3(128,15), b3(1,15)).  Returns (B, 15) f32."""
    w1, b1, w2, b2, w3, b3 = params
    B = x.shape[0]

    # Batch tile: 128 rows for streaming batches, otherwise round B up to 8.
    TB = 128 if B >= 128 else max(8, ((B + 7) // 8) * 8)
    n_tiles = pl.cdiv(B, TB)
    B_pad = n_tiles * TB

    # ---- Pack / pad everything lane-dense (128 wide), weights in bf16. ----
    x_p = jnp.zeros((B_pad, H), jnp.bfloat16).at[:B, :F].set(
        x.astype(jnp.bfloat16))
    w1_p = jnp.zeros((H, H), jnp.bfloat16).at[:F, :].set(w1.astype(jnp.bfloat16))
    w2_p = w2.astype(jnp.bfloat16)
    w3_p = jnp.zeros((H, H), jnp.bfloat16).at[:, :F].set(w3.astype(jnp.bfloat16))
    w_packed = jnp.stack([w1_p, w2_p, w3_p])                    # (3, 128, 128) bf16

    b3_p = jnp.zeros((1, H), jnp.float32).at[:, :F].set(b3)
    b_packed = jnp.concatenate([b1, b2, b3_p], axis=0)          # (3, 128) f32

    out = pl.pallas_call(
        mlp_kernel,
        out_shape=jax.ShapeDtypeStruct((B_pad, H), jnp.float32),
        grid_spec=pltpu.PrefetchScalarGridSpec(
            num_scalar_prefetch=0,
            grid=(n_tiles,),
            in_specs=[
                pl.BlockSpec((TB, H), lambda i: (i, 0)),        # x tile streams
                pl.BlockSpec((3, H, H), lambda i: (0, 0, 0)),   # weights resident
                pl.BlockSpec((3, H), lambda i: (0, 0)),         # biases resident
            ],
            out_specs=pl.BlockSpec((TB, H), lambda i: (i, 0)),  # lane-dense store
        ),
        compiler_params=pltpu.CompilerParams(
            dimension_semantics=("parallel",),                  # 2 TCs on v7x
        ),
    )(x_p, w_packed, b_packed)

    return out[:B, :F]


def init_params(key):
    # Mimics PyTorch's default U(-1/sqrt(fan_in), 1/sqrt(fan_in)) init.
    def linear(key, fan_in, fan_out):
        kw, kb = jax.random.split(key)
        bound = 1.0 / jnp.sqrt(fan_in)
        w = jax.random.uniform(kw, (fan_in, fan_out), jnp.float32, -bound, bound)
        b = jax.random.uniform(kb, (1, fan_out), jnp.float32, -bound, bound)
        return w, b

    k1, k2, k3 = jax.random.split(key, 3)
    w1, b1 = linear(k1, 15, 128)
    w2, b2 = linear(k2, 128, 128)
    w3, b3 = linear(k3, 128, 15)
    return (w1, b1, w2, b2, w3, b3)


if __name__ == "__main__":
    key = jax.random.PRNGKey(0)
    kx, kp = jax.random.split(key)
    x = jax.random.normal(kx, (8, 15), jnp.float32)
    params = init_params(kp)

    out = simple_nn_forward(x, params)
    out = jax.block_until_ready(out)

    # Reference in plain f32 JAX (same math as the PyTorch module).
    w1, b1, w2, b2, w3, b3 = params
    ref = jnp.maximum(x @ w1 + b1, 0.0)
    ref = jnp.maximum(ref @ w2 + b2, 0.0)
    ref = ref @ w3 + b3

    assert out.shape == (8, 15)
    # Loosened tolerance: kernel uses bf16 weights/activations with f32 accumulation.
    assert jnp.allclose(out, ref, atol=5e-2, rtol=5e-2), (
        float(jnp.max(jnp.abs(out - ref))))

    print("KERNEL_OK")
</pallas_src>

<mosaic_0001>
module attributes {stable_mosaic.version = 11 : i64} {
  func.func @mlp_kernel(%arg0: i32, %arg1: memref<8x128xbf16, #tpu.memory_space<vmem>>, %arg2: memref<3x128x128xbf16, #tpu.memory_space<vmem>>, %arg3: memref<3x128xf32, #tpu.memory_space<vmem>>, %arg4: memref<8x128xf32, #tpu.memory_space<vmem>>) attributes {dimension_semantics = [#tpu.dimension_semantics<parallel>], iteration_bounds = array<i64: 1>, scalar_prefetch = 0 : i64, scratch_operands = 0 : i64, tpu.core_type = #tpu.core_type<tc>, window_params = [{transform_indices = @transform_0, window_bounds = array<i64: 8, 128>}, {pipeline_mode = #tpu.pipeline_mode<synchronous>, transform_indices = @transform_1, window_bounds = array<i64: 3, 128, 128>}, {pipeline_mode = #tpu.pipeline_mode<synchronous>, transform_indices = @transform_2, window_bounds = array<i64: 3, 128>}, {transform_indices = @transform_3, window_bounds = array<i64: 8, 128>}]} {
    %c0 = arith.constant 0 : index
    %c0_0 = arith.constant 0 : index
    %0 = vector.load %arg1[%c0, %c0_0] : memref<8x128xbf16, #tpu.memory_space<vmem>>, vector<8x128xbf16>
    %c0_1 = arith.constant 0 : index
    %c0_2 = arith.constant 0 : index
    %c0_3 = arith.constant 0 : index
    %1 = vector.load %arg2[%c0_1, %c0_2, %c0_3] : memref<3x128x128xbf16, #tpu.memory_space<vmem>>, vector<1x128x128xbf16>
    %2 = vector.shape_cast %1 : vector<1x128x128xbf16> to vector<128x128xbf16>
    %cst = arith.constant dense<0.000000e+00> : vector<8x128xf32>
    %3 = tpu.matmul %0, %2, %cst {dimension_numbers = #tpu.dot_dimension_numbers<[1], [0], [0], [1], [0, 0, 1, 1], [], []>} : vector<8x128xbf16>, vector<128x128xbf16>, vector<8x128xf32> -> vector<8x128xf32>
    %c0_4 = arith.constant 0 : index
    %c0_5 = arith.constant 0 : index
    %4 = vector.load %arg3[%c0_4, %c0_5] : memref<3x128xf32, #tpu.memory_space<vmem>>, vector<1x128xf32>
    %5 = vector.broadcast %4 : vector<1x128xf32> to vector<8x128xf32>
    %6 = arith.addf %3, %5 : vector<8x128xf32>
    %cst_6 = arith.constant 0.000000e+00 : f32
    %7 = vector.broadcast %cst_6 : f32 to vector<8x128xf32>
    %8 = arith.maximumf %6, %7 : vector<8x128xf32>
    %9 = arith.truncf %8 : vector<8x128xf32> to vector<8x128xbf16>
    %c1 = arith.constant 1 : index
    %c0_7 = arith.constant 0 : index
    %c0_8 = arith.constant 0 : index
    %10 = vector.load %arg2[%c1, %c0_7, %c0_8] : memref<3x128x128xbf16, #tpu.memory_space<vmem>>, vector<1x128x128xbf16>
    %11 = vector.shape_cast %10 : vector<1x128x128xbf16> to vector<128x128xbf16>
    %cst_9 = arith.constant dense<0.000000e+00> : vector<8x128xf32>
    %12 = tpu.matmul %9, %11, %cst_9 {dimension_numbers = #tpu.dot_dimension_numbers<[1], [0], [0], [1], [0, 0, 1, 1], [], []>} : vector<8x128xbf16>, vector<128x128xbf16>, vector<8x128xf32> -> vector<8x128xf32>
    %c1_10 = arith.constant 1 : index
    %c0_11 = arith.constant 0 : index
    %13 = vector.load %arg3[%c1_10, %c0_11] : memref<3x128xf32, #tpu.memory_space<vmem>>, vector<1x128xf32>
    %14 = vector.broadcast %13 : vector<1x128xf32> to vector<8x128xf32>
    %15 = arith.addf %12, %14 : vector<8x128xf32>
    %cst_12 = arith.constant 0.000000e+00 : f32
    %16 = vector.broadcast %cst_12 : f32 to vector<8x128xf32>
    %17 = arith.maximumf %15, %16 : vector<8x128xf32>
    %18 = arith.truncf %17 : vector<8x128xf32> to vector<8x128xbf16>
    %c2 = arith.constant 2 : index
    %c0_13 = arith.constant 0 : index
    %c0_14 = arith.constant 0 : index
    %19 = vector.load %arg2[%c2, %c0_13, %c0_14] : memref<3x128x128xbf16, #tpu.memory_space<vmem>>, vector<1x128x128xbf16>
    %20 = vector.shape_cast %19 : vector<1x128x128xbf16> to vector<128x128xbf16>
    %cst_15 = arith.constant dense<0.000000e+00> : vector<8x128xf32>
    %21 = tpu.matmul %18, %20, %cst_15 {dimension_numbers = #tpu.dot_dimension_numbers<[1], [0], [0], [1], [0, 0, 1, 1], [], []>} : vector<8x128xbf16>, vector<128x128xbf16>, vector<8x128xf32> -> vector<8x128xf32>
    %c2_16 = arith.constant 2 : index
    %c0_17 = arith.constant 0 : index
    %22 = vector.load %arg3[%c2_16, %c0_17] : memref<3x128xf32, #tpu.memory_space<vmem>>, vector<1x128xf32>
    %23 = vector.broadcast %22 : vector<1x128xf32> to vector<8x128xf32>
    %24 = arith.addf %21, %23 : vector<8x128xf32>
    %c0_18 = arith.constant 0 : index
    %c0_19 = arith.constant 0 : index
    %25 = vector.load %arg4[%c0_18, %c0_19] : memref<8x128xf32, #tpu.memory_space<vmem>>, vector<8x128xf32>
    tpu.vector_store %arg4[%c0_18, %c0_19], %24 {strides = array<i32>} : memref<8x128xf32, #tpu.memory_space<vmem>>, vector<8x128xf32>,
    return
  }
  func.func @transform_0(%arg0: i32) -> (i32, i32) {
    %c0_i32 = arith.constant 0 : i32
    %c0_i32_0 = arith.constant 0 : i32
    return %arg0, %c0_i32 : i32, i32
  }
  func.func @transform_1(%arg0: i32) -> (i32, i32, i32) {
    %c0_i32 = arith.constant 0 : i32
    %c0_i32_0 = arith.constant 0 : i32
    %c0_i32_1 = arith.constant 0 : i32
    %c0_i32_2 = arith.constant 0 : i32
    return %c0_i32, %c0_i32_0, %c0_i32_1 : i32, i32, i32
  }
  func.func @transform_2(%arg0: i32) -> (i32, i32) {
    %c0_i32 = arith.constant 0 : i32
    %c0_i32_0 = arith.constant 0 : i32
    %c0_i32_1 = arith.constant 0 : i32
    return %c0_i32, %c0_i32_0 : i32, i32
  }
  func.func @transform_3(%arg0: i32) -> (i32, i32) {
    %c0_i32 = arith.constant 0 : i32
    %c0_i32_0 = arith.constant 0 : i32
    return %arg0, %c0_i32 : i32, i32
  }
}

</mosaic_0001>

<bundles_post_ra>
// kernel: tpu_custom_call.1
= control target key start
LH: loop header
LB: loop body
LE: loop exit
PB: predicated region body
PF: predicated region fallthrough
CT: control target
= control target key end

     0   :  { %8 = vsyncpa [#allocation3], 0  ;;  %s719_s0 = inlined_call_operand.hbm [shape: bf16[8,128], index: 0, kind: input, shape index: {}]   ;;  %s720_s1 = inlined_call_operand.hbm [shape: bf16[3,128,128], index: 1, kind: input, shape index: {}]   ;;  %s721_s2 = inlined_call_operand.vmem [shape: f32[3,128], index: 2, kind: input, shape index: {}]   ;;  %s722_s3 = inlined_call_operand.hbm [shape: f32[8,128], index: 3, kind: output, shape index: {}]  }
   0x1   :  { %9 = vsyncpa [#allocation6], 0 }
   0x2   :  { %10 = vsyncpa [#allocation4], 0  ;;  %s610_s12 = smov [#allocation2]   ;;  %s611_s14 = smov [#allocation5]  }
   0x3   :  { %s17_s13 = sshll.u32 %s610_s12, 4  ;;  %s26_s15 = sshll.u32 %s611_s14, 4  ;;  %s18_s13 = int_to_ptr.vmem [resolvable:$true] %s17_s13  ;;  %s637_s15 = int_to_ptr.vmem [resolvable:$true] %s26_s15 }
   0x4   :  { %s538_s18 = scalar_lea.hbm %s719_s0, 64 }
   0x5   :  { %p539_p0 = scmp.ne.s32.totalorder %s719_s0, %s538_s18  ;;  %p542_p1 = scmp.lt.u32.totalorder %s538_s18, %s719_s0 }
   0x7   :  { %p544_p2 = pnand %p542_p1, %p539_p0 }
   0x9   :  { %547 = shalt.err (!%p544_p2)
}
   0xa   :  { %s548_s23 = scalar_lea.vmem %s18_s13, 64  ;;  %p553_p4 = scmp.lt.s32.totalorder %s18_s13, %s18_s13 }
   0xb   :  { %p549_p3 = scmp.ne.s32.totalorder %s18_s13, %s548_s23  ;;  %p554_p5 = scmp.lt.s32.totalorder %s548_s23, %s548_s23 }
   0xd   :  { %p555_p6 = por %p554_p5, %p553_p4 }
   0xf   :  { %p556_p7 = pnand %p555_p6, %p549_p3 }
  0x11   :  { %559 = shalt.err (!%p556_p7)
}
  0x12   :  { %20 = dma.hbm_to_vmem [thread:$0]  %s719_s0, 64, %s18_s13, [#allocation3]  }
  0x13   :  { %s560_s28 = scalar_lea.hbm %s720_s1, 3072 }
  0x14   :  { %p561_p8 = scmp.ne.s32.totalorder %s720_s1, %s560_s28  ;;  %p564_p9 = scmp.lt.u32.totalorder %s560_s28, %s720_s1 }
  0x16   :  { %p566_p10 = pnand %p564_p9, %p561_p8 }
  0x18   :  { %569 = shalt.err (!%p566_p10)
}
  0x19   :  { %s570_s6 = scalar_lea.vmem %s637_s15, 3072  ;;  %p575_p12 = scmp.lt.s32.totalorder %s637_s15, %s637_s15 }
  0x1a   :  { %p571_p11 = scmp.ne.s32.totalorder %s637_s15, %s570_s6  ;;  %p576_p13 = scmp.lt.s32.totalorder %s570_s6, %s570_s6 }
  0x1c   :  { %p577_p0 = por %p576_p13, %p575_p12 }
  0x1e   :  { %p578_p1 = pnand %p577_p0, %p571_p11 }
  0x20   :  { %581 = shalt.err (!%p578_p1)
}
  0x21   :  { %s612_s0 = smov 64   ;;  %s613_s7 = smov 4  }
  0x22   :  { %32 = dma.hbm_to_vmem [thread:$0]  %s720_s1, 3072, %s637_s15, [#allocation6], %s612_s0, %s612_s0, %s613_s7  }
  0x23   :  { %604 = dma.done.wait [#allocation3], 64  }
  0x24   :  { %605 = vsyncadd [#allocation3], 4294967232 }
  0x25   :  { %606 = dma.done.wait [#allocation6], 3072  }
  0x26   :  { %607 = vsyncadd [#allocation6], 4294964224  ;;  %v614_v0 = vmov 0.0   ;;  %vm615_vm0 = vmmov 0   ;;  %v514_v1 = vld [vmem:[#allocation5] sm:$0xff]   ;;  %v515_v2 = vld [vmem:[#allocation5 + $0x8] sm:$0xff]  }
  0x27   :  { %447 = vmatprep.subr.bf16.mxu0 %v614_v0  ;;  %463 = vmatprep.mubr.msk.bf16.mxu0 %vm615_vm0, %v614_v0  ;;  %v516_v3 = vld [vmem:[#allocation5 + $0x10] sm:$0xff]   ;;  %v522_v4 = vld [vmem:[#allocation5 + $0x40] sm:$0xff]   ;;  %v517_v5 = vld [vmem:[#allocation5 + $0x18] sm:$0xff]   ;;  %s616_s15 = smov [#allocation7]  }
  0x28   :  { %467 = vmatprep.subr.bf16.mxu1 %v614_v0  ;;  %483 = vmatprep.mubr.msk.bf16.mxu1 %vm615_vm0, %v614_v0  ;;  %v523_v6 = vld [vmem:[#allocation5 + $0x48] sm:$0xff]   ;;  %v518_v7 = vld [vmem:[#allocation5 + $0x20] sm:$0xff]   ;;  %v524_v8 = vld [vmem:[#allocation5 + $0x50] sm:$0xff]   ;;  %s383_s16 = sshll.u32 %s616_s15, 4  ;;  %s384_s16 = int_to_ptr.vmem [resolvable:$true] %s383_s16 }
  0x29   :  { %448 = vmatpush3.bf16.msra.mxu0 %v514_v1  ;;  %468 = vmatpush3.bf16.msra.mxu1 %v522_v4  ;;  %v519_v9 = vld [vmem:[#allocation5 + $0x28] sm:$0xff]   ;;  %v525_v10 = vld [vmem:[#allocation5 + $0x58] sm:$0xff]   ;;  %v520_v11 = vld [vmem:[#allocation5 + $0x30] sm:$0xff]   ;;  %s582_s17 = scalar_lea.vmem %s384_s16, 128  ;;  %p587_p3 = scmp.lt.s32.totalorder %s384_s16, %s384_s16 }
  0x2a   :  { %449 = vmatprep.subr.bf16.mxu0 %v614_v0  ;;  %469 = vmatprep.subr.bf16.mxu1 %v614_v0  ;;  %v526_v12 = vld [vmem:[#allocation5 + $0x60] sm:$0xff]   ;;  %v521_v13 = vld [vmem:[#allocation5 + $0x38] sm:$0xff]   ;;  %v527_v14 = vld [vmem:[#allocation5 + $0x68] sm:$0xff]   ;;  %p583_p2 = scmp.ne.s32.totalorder %s384_s16, %s582_s17  ;;  %p588_p4 = scmp.lt.s32.totalorder %s582_s17, %s582_s17 }
  0x2b   :  { %v42_v15 = vld [vmem:[#allocation2] sm:$0xf]  ;;  %v528_v16 = vld [vmem:[#allocation5 + $0x70] sm:$0xff]   ;;  %v530_v18 = vld [vmem:[#allocation5 + $0x80] sm:$0xff]  }
  0x2c   :  { %v529_v17 = vld [vmem:[#allocation5 + $0x78] sm:$0xff]   ;;  %v531_v19 = vld [vmem:[#allocation5 + $0x88] sm:$0xff]   ;;  %v532_v20 = vld [vmem:[#allocation5 + $0x90] sm:$0xff]   ;;  %p589_p5 = por %p588_p4, %p587_p3 }
  0x2d   :  { %450 = vmatpush3.bf16.msra.mxu0 %v515_v2  ;;  %470 = vmatpush3.bf16.msra.mxu1 %v523_v6  ;;  %v533_v21 = vld [vmem:[#allocation5 + $0x98] sm:$0xff]   ;;  %v534_v22 = vld [vmem:[#allocation5 + $0xa0] sm:$0xff]   ;;  %v535_v23 = vld [vmem:[#allocation5 + $0xa8] sm:$0xff]  }
  0x2e   :  { %451 = vmatprep.subr.bf16.mxu0 %v614_v0  ;;  %471 = vmatprep.subr.bf16.mxu1 %v614_v0  ;;  %v393_v24 = vld [vmem:[%s721_s2] ss:$0 sm:$0xff]  ;;  %v536_v32 = vld [vmem:[#allocation5 + $0xb0] sm:$0xff]   ;;  %v402_v34 = vld [vmem:[%s721_s2 + $0x1] ss:$0 sm:$0xff]  ;;  %p590_p6 = pnand %p589_p5, %p583_p2 }
  0x2f   :  { %v537_v33 = vld [vmem:[#allocation5 + $0xb8] sm:$0xff]  }
  0x30   :  { %v411_v42 = vld [vmem:[%s721_s2 + $0x2] ss:$0 sm:$0xff] }
  0x31   :  { %452 = vmatpush3.bf16.msra.mxu0 %v516_v3  ;;  %472 = vmatpush3.bf16.msra.mxu1 %v524_v8 }
  0x32   :  { %453 = vmatprep.subr.bf16.mxu0 %v614_v0  ;;  %473 = vmatprep.subr.bf16.mxu1 %v614_v0 }
  0x35   :  { %454 = vmatpush3.bf16.msra.mxu0 %v517_v5  ;;  %474 = vmatpush3.bf16.msra.mxu1 %v525_v10 }
  0x36   :  { %455 = vmatprep.subr.bf16.mxu0 %v614_v0  ;;  %475 = vmatprep.subr.bf16.mxu1 %v614_v0 }
  0x39   :  { %456 = vmatpush3.bf16.msra.mxu0 %v518_v7  ;;  %476 = vmatpush3.bf16.msra.mxu1 %v526_v12 }
  0x3a   :  { %457 = vmatprep.subr.bf16.mxu0 %v614_v0  ;;  %477 = vmatprep.subr.bf16.mxu1 %v614_v0 }
  0x3d   :  { %458 = vmatpush3.bf16.msra.mxu0 %v519_v9  ;;  %478 = vmatpush3.bf16.msra.mxu1 %v527_v14 }
  0x3e   :  { %459 = vmatprep.subr.bf16.mxu0 %v614_v0  ;;  %479 = vmatprep.subr.bf16.mxu1 %v614_v0 }
  0x41   :  { %460 = vmatpush3.bf16.msra.mxu0 %v520_v11  ;;  %480 = vmatpush3.bf16.msra.mxu1 %v528_v16 }
  0x42   :  { %461 = vmatprep.subr.bf16.mxu0 %v614_v0  ;;  %481 = vmatprep.subr.bf16.mxu1 %v614_v0 }
  0x45   :  { %462 = vmatpush3.bf16.msra.mxu0 %v521_v13  ;;  %482 = vmatpush3.bf16.msra.mxu1 %v529_v17 }
  0x46   :  { %487 = vmatprep.subr.bf16.mxu0 %v614_v0 }
  0x48   :  { %464 = vmatmul.mubr.bf16.vlgmr.msra.gmra.mrb[0].mxu0 %v42_v15 }
  0x49   :  { %503 = vmatprep.mubr.msk.bf16.mxu0 %vm615_vm0, %v614_v0  ;;  %488 = vmatpush3.bf16.msra.mxu0 %v530_v18 }
  0x4a   :  { %489 = vmatprep.subr.bf16.mxu0 %v614_v0 }
  0x4d   :  { %490 = vmatpush3.bf16.msra.mxu0 %v531_v19 }
  0x4e   :  { %491 = vmatprep.subr.bf16.mxu0 %v614_v0 }
  0x51   :  { %492 = vmatpush3.bf16.msra.mxu0 %v532_v20 }
  0x52   :  { %493 = vmatprep.subr.bf16.mxu0 %v614_v0 }
  0x55   :  { %494 = vmatpush3.bf16.msra.mxu0 %v533_v21 }
  0x56   :  { %495 = vmatprep.subr.bf16.mxu0 %v614_v0 }
  0x59   :  { %496 = vmatpush3.bf16.msra.mxu0 %v534_v22 }
  0x5a   :  { %497 = vmatprep.subr.bf16.mxu0 %v614_v0 }
  0x5d   :  { %498 = vmatpush3.bf16.msra.mxu0 %v535_v23 }
  0x5e   :  { %499 = vmatprep.subr.bf16.mxu0 %v614_v0 }
  0x61   :  { %500 = vmatpush3.bf16.msra.mxu0 %v536_v32 }
  0x62   :  { %501 = vmatprep.subr.bf16.mxu0 %v614_v0 }
  0x65   :  { %502 = vmatpush3.bf16.msra.mxu0 %v537_v33 }
 0x11b   :  { %v146_v25 = vpop.f32.mrb[0].mxu0 }
 0x11c   :  { %v147_v26 = vadd.f32 %v393_v24, %v146_v25  ;;  %v465_v27 = vpop.f32.mrb[1].mxu0 }
 0x11d   :  { %v149_v28 = vpop.f32.mrb[2].mxu0 }
 0x11e   :  { %v152_v29 = vmax.f32 %v147_v26, 0.0  ;;  %v466_v30 = vpop.f32.mrb[3].mxu0 }
 0x120   :  { %v153_v31 = vpack.c.bf16 %v152_v29, %v152_v29 }
 0x122   :  { %484 = vmatmul.mubr.bf16.vlgmr.msra.gmra.mrb[0].mxu1 %v153_v31 }
 0x1f5   :  { %v258_v35 = vpop.f32.mrb[0].mxu1 }
 0x1f6   :  { %v259_v36 = vadd.f32 %v402_v34, %v258_v35  ;;  %v485_v37 = vpop.f32.mrb[1].mxu1 }
 0x1f7   :  { %v261_v38 = vpop.f32.mrb[2].mxu1 }
 0x1f8   :  { %v264_v39 = vmax.f32 %v259_v36, 0.0  ;;  %v486_v40 = vpop.f32.mrb[3].mxu1 }
 0x1fa   :  { %v265_v41 = vpack.c.bf16 %v264_v39, %v264_v39 }
 0x1fc   :  { %504 = vmatmul.mubr.bf16.vlgmr.msra.gmra.mrb[4].mxu0 %v265_v41 }
 0x2cf   :  { %v370_v43 = vpop.f32.mrb[4].mxu0 }
 0x2d0   :  { %v371_v44 = vadd.f32 %v411_v42, %v370_v43  ;;  %v505_v45 = vpop.f32.mrb[5].mxu0 }
 0x2d1   :  { %v373_v46 = vpop.f32.mrb[6].mxu0 }
 0x2d2   :  { %376 = vst [vmem:[#allocation7] sm:$0xff] %v371_v44  ;;  %v506_v47 = vpop.f32.mrb[7].mxu0 }
 0x2d3   :  { %593 = shalt.err (!%p590_p6)
}
 0x2d4   :  { %s594_s2 = scalar_lea.hbm %s722_s3, 128 }
 0x2d5   :  { %p595_p7 = scmp.ne.s32.totalorder %s722_s3, %s594_s2  ;;  %p598_p8 = scmp.lt.u32.totalorder %s594_s2, %s722_s3 }
 0x2d7   :  { %p600_p9 = pnand %p598_p8, %p595_p7 }
 0x2d9   :  { %603 = shalt.err (!%p600_p9)
}
 0x2da   :  { %386 = dma.vmem_to_hbm [thread:$0]  %s384_s16, 128, %s722_s3, [#allocation4]  }
 0x2db   :  { %608 = dma.done.wait [#allocation4], 128  }
 0x2dc   :  { %609 = vsyncadd [#allocation4], 4294967168 }
 0x2dd   :  { %390 = vsyncpa [#allocation3], 1 }
 0x2de   :  { %391 = vsyncpa [#allocation6], 1 }
 0x2df   :  { %392 = vsyncpa [#allocation4], 1 }

</bundles_post_ra>
